<compile_context>
chip_gen: v7x
topology: tpu7x:2x2x1
jax: 0.10.0
libtpu: 0.0.40
codegen_flags: <defaults>
</compile_context>

<pallas_src>
import jax
import jax.numpy as jnp
from jax import lax
from jax.experimental import pallas as pl
from jax.experimental.pallas import tpu as pltpu


def _make_loss_kernel(total_b, bt):
    """Kernel factory closing over the static batch size / batch tile (for tail mask)."""
    ragged = (total_b % bt) != 0

    def kernel(pred_ref, targ_ref, out_ref):
        # pred_ref / targ_ref: (bt, H, W) batch block (channel dim squeezed by BlockSpec).
        # out_ref: (8, 128) f32 partial-sum tile private to this grid step.
        p = pred_ref[...].astype(jnp.float32)
        t = targ_ref[...].astype(jnp.float32)
        _, h, w = p.shape

        if ragged:
            # Mask out the out-of-bounds tail of the last batch block (garbage data).
            bidx = pl.program_id(0) * bt + lax.broadcasted_iota(jnp.int32, p.shape, 0)
            valid = bidx < total_b
            p = jnp.where(valid, p, jnp.float32(0.0))
            t = jnp.where(valid, t, jnp.float32(0.0))

        # Edge masks: built once, reused for every shift of p, t and their gradients.
        ci = lax.broadcasted_iota(jnp.int32, p.shape, 2)
        ri = lax.broadcasted_iota(jnp.int32, p.shape, 1)
        col_ok_p = ci < (w - 1)   # reading column j+1 is in range
        col_ok_m = ci >= 1        # reading column j-1 is in range
        row_ok_p = ri < (h - 1)   # reading row    i+1 is in range
        row_ok_m = ri >= 1        # reading row    i-1 is in range
        zero = jnp.float32(0.0)

        # Zero-padded neighbor shifts reproducing F.conv2d(padding=1):
        # rolls take the XLU slot, the selects the VPU (binding unit has slack on XLU).
        def cshift_p(x):  # y[.., j] = x[.., j+1] (0 at right edge)
            return jnp.where(col_ok_p, pltpu.roll(x, shift=w - 1, axis=2), zero)

        def cshift_m(x):  # y[.., j] = x[.., j-1] (0 at left edge)
            return jnp.where(col_ok_m, pltpu.roll(x, shift=1, axis=2), zero)

        def rshift_p(x):  # y[.., i, :] = x[.., i+1, :] (0 at bottom edge)
            return jnp.where(row_ok_p, pltpu.roll(x, shift=h - 1, axis=1), zero)

        def rshift_m(x):  # y[.., i, :] = x[.., i-1, :] (0 at top edge)
            return jnp.where(row_ok_m, pltpu.roll(x, shift=1, axis=1), zero)

        def sobel_mag(img):
            # Cross-correlation (PyTorch conv2d semantics) with
            #   gx = [[-1,0,1],[-2,0,2],[-1,0,1]], gy = [[-1,-2,-1],[0,0,0],[1,2,1]]
            d_col = cshift_p(img) - cshift_m(img)
            gx = rshift_m(d_col) + 2.0 * d_col + rshift_p(d_col)
            d_row = rshift_p(img) - rshift_m(img)
            gy = cshift_m(d_row) + 2.0 * d_row + cshift_p(d_row)
            return jnp.sqrt(gx * gx + gy * gy + jnp.float32(1e-8))

        diff = jnp.abs(p - t)
        rel = diff * pl.reciprocal(t + jnp.float32(1e-3), approx=True)
        grad_diff = jnp.abs(sobel_mag(p) - sobel_mag(t))

        s_l1 = jnp.sum(diff)
        s_grad = jnp.sum(grad_diff)
        s_rel = jnp.sum(rel)

        # Lane-dense (8, 128) output block: row 0 = l1 sum, row 1 = grad sum,
        # row 2 = rel sum (splatted across lanes); wrapper reads [*, row, 0].
        row8 = lax.broadcasted_iota(jnp.int32, (8, 128), 0)
        out_ref[...] = jnp.where(
            row8 == 0, s_l1,
            jnp.where(row8 == 1, s_grad,
                      jnp.where(row8 == 2, s_rel, jnp.float32(0.0))))

    return kernel


def temperature_aware_loss(pred, target, alpha=1.0, beta=0.1, gamma=0.05):
    """pred, target: (B, 1, H, W) temperature maps (f32 or bf16, NCHW).

    Returns (total_loss, dict of scalar losses), matching the PyTorch module forward.
    """
    B, C, H, W = pred.shape
    assert C == 1, "sobel conv in the reference module requires a single channel"
    assert target.shape == pred.shape

    itemsize = jnp.dtype(pred.dtype).itemsize

    # ---- generation-aware block sizing / VMEM budget ----
    try:
        vmem_cap = int(pltpu.get_tpu_info().vmem_capacity_bytes)
    except Exception:
        vmem_cap = 128 << 20          # v5e/v6e physical; v7x reports 64 MiB here
    budget = int(0.70 * vmem_cap)
    # Peak VMEM per step ~ 2 inputs x 2 pipeline buffers (input dtype) plus ~10 f32
    # block-sized elementwise intermediates of the vectorized sobel / L1 / rel chain.
    bytes_per_elem = 4 * itemsize + 10 * 4
    elems_cap = max(H * W, budget // bytes_per_elem)
    bt = int(max(1, min(B, elems_cap // (H * W))))
    nb = pl.cdiv(B, bt)

    block_in_bytes = bt * H * W * itemsize
    peak_est = 4 * block_in_bytes + 10 * bt * H * W * 4 + (2 << 20)
    vmem_limit = int(min(max(peak_est, 32 << 20), int(0.75 * vmem_cap)))

    partial = pl.pallas_call(
        _make_loss_kernel(B, bt),
        out_shape=jax.ShapeDtypeStruct((nb, 8, 128), jnp.float32),
        grid=(nb,),
        in_specs=[
            pl.BlockSpec((bt, None, H, W), lambda b: (b, 0, 0, 0)),
            pl.BlockSpec((bt, None, H, W), lambda b: (b, 0, 0, 0)),
        ],
        out_specs=pl.BlockSpec((None, 8, 128), lambda b: (b, 0, 0)),
        compiler_params=pltpu.CompilerParams(
            dimension_semantics=("parallel",),   # steps are independent: v7x uses both TCs
            vmem_limit_bytes=vmem_limit),
    )(pred, target)

    n = jnp.float32(B * H * W)
    l1_loss = jnp.sum(partial[:, 0, 0]) / n
    grad_loss = jnp.sum(partial[:, 1, 0]) / n
    rel_loss = jnp.sum(partial[:, 2, 0]) / n
    total_loss = alpha * l1_loss + beta * grad_loss + gamma * rel_loss
    return total_loss, {
        "l1_loss": l1_loss,
        "grad_loss": grad_loss,
        "rel_loss": rel_loss,
        "total_loss": total_loss,
    }


def _reference(pred, target, alpha=1.0, beta=0.1, gamma=0.05):
    """Pure-JAX reference of the PyTorch module (for correctness check)."""
    sobel_x = jnp.array([[-1., 0., 1.], [-2., 0., 2.], [-1., 0., 1.]], jnp.float32)[None, None]
    sobel_y = jnp.array([[-1., -2., -1.], [0., 0., 0.], [1., 2., 1.]], jnp.float32)[None, None]

    def conv(x, w):
        return jax.lax.conv_general_dilated(
            x, w, window_strides=(1, 1), padding=((1, 1), (1, 1)),
            dimension_numbers=("NCHW", "OIHW", "NCHW"))

    l1 = jnp.mean(jnp.abs(pred - target))
    pg = jnp.sqrt(conv(pred, sobel_x) ** 2 + conv(pred, sobel_y) ** 2 + 1e-8)
    tg = jnp.sqrt(conv(target, sobel_x) ** 2 + conv(target, sobel_y) ** 2 + 1e-8)
    grad = jnp.mean(jnp.abs(pg - tg))
    rel = jnp.mean(jnp.abs(pred - target) / (target + 1e-3))
    return alpha * l1 + beta * grad + gamma * rel


if __name__ == "__main__":
    key = jax.random.PRNGKey(0)
    k1, k2 = jax.random.split(key)
    # Small "temperature maps": batch=2, channels=1, spatial=16x16.
    pred = jax.random.uniform(k1, (2, 1, 16, 16), jnp.float32, minval=20.0, maxval=40.0)
    target = jax.random.uniform(k2, (2, 1, 16, 16), jnp.float32, minval=20.0, maxval=40.0)

    total, logs = temperature_aware_loss(pred, target)
    total = jax.block_until_ready(total)
    logs = {k: float(v) for k, v in logs.items()}  # mirrors .item() in the PyTorch module

    ref_total = float(_reference(pred, target))
    assert abs(float(total) - ref_total) < 1e-4 * max(1.0, abs(ref_total)), (float(total), ref_total)

    print("KERNEL_OK")
</pallas_src>

<mosaic_0001>
module attributes {stable_mosaic.version = 11 : i64} {
  func.func @kernel(%arg0: i32, %arg1: memref<2x1x16x16xf32, #tpu.memory_space<vmem>>, %arg2: memref<2x1x16x16xf32, #tpu.memory_space<vmem>>, %arg3: memref<1x8x128xf32, #tpu.memory_space<vmem>>) attributes {dimension_semantics = [#tpu.dimension_semantics<parallel>], iteration_bounds = array<i64: 1>, scalar_prefetch = 0 : i64, scratch_operands = 0 : i64, tpu.core_type = #tpu.core_type<tc>, window_params = [{transform_indices = @transform_0, window_bounds = array<i64: 2, 1, 16, 16>}, {transform_indices = @transform_1, window_bounds = array<i64: 2, 1, 16, 16>}, {transform_indices = @transform_2, window_bounds = array<i64: 1, 8, 128>}]} {
    %c0 = arith.constant 0 : index
    %c0_0 = arith.constant 0 : index
    %c0_1 = arith.constant 0 : index
    %c0_2 = arith.constant 0 : index
    %0 = vector.load %arg1[%c0, %c0_0, %c0_1, %c0_2] : memref<2x1x16x16xf32, #tpu.memory_space<vmem>>, vector<2x1x16x16xf32>
    %1 = vector.shape_cast %0 : vector<2x1x16x16xf32> to vector<2x16x16xf32>
    %c0_3 = arith.constant 0 : index
    %c0_4 = arith.constant 0 : index
    %c0_5 = arith.constant 0 : index
    %c0_6 = arith.constant 0 : index
    %2 = vector.load %arg2[%c0_3, %c0_4, %c0_5, %c0_6] : memref<2x1x16x16xf32, #tpu.memory_space<vmem>>, vector<2x1x16x16xf32>
    %3 = vector.shape_cast %2 : vector<2x1x16x16xf32> to vector<2x16x16xf32>
    %4 = tpu.iota {dimensions = array<i32: 2>} : vector<2x16x16xi32>
    %5 = tpu.iota {dimensions = array<i32: 1>} : vector<2x16x16xi32>
    %c15_i32 = arith.constant 15 : i32
    %6 = vector.broadcast %c15_i32 : i32 to vector<2x16x16xi32>
    %7 = arith.cmpi slt, %4, %6 : vector<2x16x16xi32>
    %c1_i32 = arith.constant 1 : i32
    %8 = vector.broadcast %c1_i32 : i32 to vector<2x16x16xi32>
    %9 = arith.cmpi sge, %4, %8 : vector<2x16x16xi32>
    %c15_i32_7 = arith.constant 15 : i32
    %10 = vector.broadcast %c15_i32_7 : i32 to vector<2x16x16xi32>
    %11 = arith.cmpi slt, %5, %10 : vector<2x16x16xi32>
    %c1_i32_8 = arith.constant 1 : i32
    %12 = vector.broadcast %c1_i32_8 : i32 to vector<2x16x16xi32>
    %13 = arith.cmpi sge, %5, %12 : vector<2x16x16xi32>
    %14 = arith.subf %1, %3 : vector<2x16x16xf32>
    %15 = math.absf %14 : vector<2x16x16xf32>
    %cst = arith.constant 1.000000e-03 : f32
    %16 = vector.broadcast %cst : f32 to vector<2x16x16xf32>
    %17 = arith.addf %3, %16 : vector<2x16x16xf32>
    %18 = tpu.reciprocal %17 {approx = true} : vector<2x16x16xf32> -> vector<2x16x16xf32>
    %19 = arith.mulf %15, %18 : vector<2x16x16xf32>
    %c15_i32_9 = arith.constant 15 : i32
    %20 = tpu.dynamic_rotate %1 by %c15_i32_9 dim 2 : vector<2x16x16xf32>, i32 -> vector<2x16x16xf32>
    %cst_10 = arith.constant 0.000000e+00 : f32
    %21 = vector.broadcast %cst_10 : f32 to vector<2x16x16xf32>
    %22 = arith.select %7, %20, %21 : vector<2x16x16xi1>, vector<2x16x16xf32>
    %c1_i32_11 = arith.constant 1 : i32
    %23 = tpu.dynamic_rotate %1 by %c1_i32_11 dim 2 : vector<2x16x16xf32>, i32 -> vector<2x16x16xf32>
    %cst_12 = arith.constant 0.000000e+00 : f32
    %24 = vector.broadcast %cst_12 : f32 to vector<2x16x16xf32>
    %25 = arith.select %9, %23, %24 : vector<2x16x16xi1>, vector<2x16x16xf32>
    %26 = arith.subf %22, %25 : vector<2x16x16xf32>
    %c1_i32_13 = arith.constant 1 : i32
    %27 = tpu.dynamic_rotate %26 by %c1_i32_13 dim 1 : vector<2x16x16xf32>, i32 -> vector<2x16x16xf32>
    %cst_14 = arith.constant 0.000000e+00 : f32
    %28 = vector.broadcast %cst_14 : f32 to vector<2x16x16xf32>
    %29 = arith.select %13, %27, %28 : vector<2x16x16xi1>, vector<2x16x16xf32>
    %cst_15 = arith.constant 2.000000e+00 : f32
    %30 = vector.broadcast %cst_15 : f32 to vector<2x16x16xf32>
    %31 = arith.mulf %30, %26 : vector<2x16x16xf32>
    %32 = arith.addf %29, %31 : vector<2x16x16xf32>
    %c15_i32_16 = arith.constant 15 : i32
    %33 = tpu.dynamic_rotate %26 by %c15_i32_16 dim 1 : vector<2x16x16xf32>, i32 -> vector<2x16x16xf32>
    %cst_17 = arith.constant 0.000000e+00 : f32
    %34 = vector.broadcast %cst_17 : f32 to vector<2x16x16xf32>
    %35 = arith.select %11, %33, %34 : vector<2x16x16xi1>, vector<2x16x16xf32>
    %36 = arith.addf %32, %35 : vector<2x16x16xf32>
    %c15_i32_18 = arith.constant 15 : i32
    %37 = tpu.dynamic_rotate %1 by %c15_i32_18 dim 1 : vector<2x16x16xf32>, i32 -> vector<2x16x16xf32>
    %cst_19 = arith.constant 0.000000e+00 : f32
    %38 = vector.broadcast %cst_19 : f32 to vector<2x16x16xf32>
    %39 = arith.select %11, %37, %38 : vector<2x16x16xi1>, vector<2x16x16xf32>
    %c1_i32_20 = arith.constant 1 : i32
    %40 = tpu.dynamic_rotate %1 by %c1_i32_20 dim 1 : vector<2x16x16xf32>, i32 -> vector<2x16x16xf32>
    %cst_21 = arith.constant 0.000000e+00 : f32
    %41 = vector.broadcast %cst_21 : f32 to vector<2x16x16xf32>
    %42 = arith.select %13, %40, %41 : vector<2x16x16xi1>, vector<2x16x16xf32>
    %43 = arith.subf %39, %42 : vector<2x16x16xf32>
    %c1_i32_22 = arith.constant 1 : i32
    %44 = tpu.dynamic_rotate %43 by %c1_i32_22 dim 2 : vector<2x16x16xf32>, i32 -> vector<2x16x16xf32>
    %cst_23 = arith.constant 0.000000e+00 : f32
    %45 = vector.broadcast %cst_23 : f32 to vector<2x16x16xf32>
    %46 = arith.select %9, %44, %45 : vector<2x16x16xi1>, vector<2x16x16xf32>
    %cst_24 = arith.constant 2.000000e+00 : f32
    %47 = vector.broadcast %cst_24 : f32 to vector<2x16x16xf32>
    %48 = arith.mulf %47, %43 : vector<2x16x16xf32>
    %49 = arith.addf %46, %48 : vector<2x16x16xf32>
    %c15_i32_25 = arith.constant 15 : i32
    %50 = tpu.dynamic_rotate %43 by %c15_i32_25 dim 2 : vector<2x16x16xf32>, i32 -> vector<2x16x16xf32>
    %cst_26 = arith.constant 0.000000e+00 : f32
    %51 = vector.broadcast %cst_26 : f32 to vector<2x16x16xf32>
    %52 = arith.select %7, %50, %51 : vector<2x16x16xi1>, vector<2x16x16xf32>
    %53 = arith.addf %49, %52 : vector<2x16x16xf32>
    %54 = arith.mulf %36, %36 : vector<2x16x16xf32>
    %55 = arith.mulf %53, %53 : vector<2x16x16xf32>
    %56 = arith.addf %54, %55 : vector<2x16x16xf32>
    %cst_27 = arith.constant 9.99999993E-9 : f32
    %57 = vector.broadcast %cst_27 : f32 to vector<2x16x16xf32>
    %58 = arith.addf %56, %57 : vector<2x16x16xf32>
    %59 = math.sqrt %58 : vector<2x16x16xf32>
    %c15_i32_28 = arith.constant 15 : i32
    %60 = tpu.dynamic_rotate %3 by %c15_i32_28 dim 2 : vector<2x16x16xf32>, i32 -> vector<2x16x16xf32>
    %cst_29 = arith.constant 0.000000e+00 : f32
    %61 = vector.broadcast %cst_29 : f32 to vector<2x16x16xf32>
    %62 = arith.select %7, %60, %61 : vector<2x16x16xi1>, vector<2x16x16xf32>
    %c1_i32_30 = arith.constant 1 : i32
    %63 = tpu.dynamic_rotate %3 by %c1_i32_30 dim 2 : vector<2x16x16xf32>, i32 -> vector<2x16x16xf32>
    %cst_31 = arith.constant 0.000000e+00 : f32
    %64 = vector.broadcast %cst_31 : f32 to vector<2x16x16xf32>
    %65 = arith.select %9, %63, %64 : vector<2x16x16xi1>, vector<2x16x16xf32>
    %66 = arith.subf %62, %65 : vector<2x16x16xf32>
    %c1_i32_32 = arith.constant 1 : i32
    %67 = tpu.dynamic_rotate %66 by %c1_i32_32 dim 1 : vector<2x16x16xf32>, i32 -> vector<2x16x16xf32>
    %cst_33 = arith.constant 0.000000e+00 : f32
    %68 = vector.broadcast %cst_33 : f32 to vector<2x16x16xf32>
    %69 = arith.select %13, %67, %68 : vector<2x16x16xi1>, vector<2x16x16xf32>
    %cst_34 = arith.constant 2.000000e+00 : f32
    %70 = vector.broadcast %cst_34 : f32 to vector<2x16x16xf32>
    %71 = arith.mulf %70, %66 : vector<2x16x16xf32>
    %72 = arith.addf %69, %71 : vector<2x16x16xf32>
    %c15_i32_35 = arith.constant 15 : i32
    %73 = tpu.dynamic_rotate %66 by %c15_i32_35 dim 1 : vector<2x16x16xf32>, i32 -> vector<2x16x16xf32>
    %cst_36 = arith.constant 0.000000e+00 : f32
    %74 = vector.broadcast %cst_36 : f32 to vector<2x16x16xf32>
    %75 = arith.select %11, %73, %74 : vector<2x16x16xi1>, vector<2x16x16xf32>
    %76 = arith.addf %72, %75 : vector<2x16x16xf32>
    %c15_i32_37 = arith.constant 15 : i32
    %77 = tpu.dynamic_rotate %3 by %c15_i32_37 dim 1 : vector<2x16x16xf32>, i32 -> vector<2x16x16xf32>
    %cst_38 = arith.constant 0.000000e+00 : f32
    %78 = vector.broadcast %cst_38 : f32 to vector<2x16x16xf32>
    %79 = arith.select %11, %77, %78 : vector<2x16x16xi1>, vector<2x16x16xf32>
    %c1_i32_39 = arith.constant 1 : i32
    %80 = tpu.dynamic_rotate %3 by %c1_i32_39 dim 1 : vector<2x16x16xf32>, i32 -> vector<2x16x16xf32>
    %cst_40 = arith.constant 0.000000e+00 : f32
    %81 = vector.broadcast %cst_40 : f32 to vector<2x16x16xf32>
    %82 = arith.select %13, %80, %81 : vector<2x16x16xi1>, vector<2x16x16xf32>
    %83 = arith.subf %79, %82 : vector<2x16x16xf32>
    %c1_i32_41 = arith.constant 1 : i32
    %84 = tpu.dynamic_rotate %83 by %c1_i32_41 dim 2 : vector<2x16x16xf32>, i32 -> vector<2x16x16xf32>
    %cst_42 = arith.constant 0.000000e+00 : f32
    %85 = vector.broadcast %cst_42 : f32 to vector<2x16x16xf32>
    %86 = arith.select %9, %84, %85 : vector<2x16x16xi1>, vector<2x16x16xf32>
    %cst_43 = arith.constant 2.000000e+00 : f32
    %87 = vector.broadcast %cst_43 : f32 to vector<2x16x16xf32>
    %88 = arith.mulf %87, %83 : vector<2x16x16xf32>
    %89 = arith.addf %86, %88 : vector<2x16x16xf32>
    %c15_i32_44 = arith.constant 15 : i32
    %90 = tpu.dynamic_rotate %83 by %c15_i32_44 dim 2 : vector<2x16x16xf32>, i32 -> vector<2x16x16xf32>
    %cst_45 = arith.constant 0.000000e+00 : f32
    %91 = vector.broadcast %cst_45 : f32 to vector<2x16x16xf32>
    %92 = arith.select %7, %90, %91 : vector<2x16x16xi1>, vector<2x16x16xf32>
    %93 = arith.addf %89, %92 : vector<2x16x16xf32>
    %94 = arith.mulf %76, %76 : vector<2x16x16xf32>
    %95 = arith.mulf %93, %93 : vector<2x16x16xf32>
    %96 = arith.addf %94, %95 : vector<2x16x16xf32>
    %cst_46 = arith.constant 9.99999993E-9 : f32
    %97 = vector.broadcast %cst_46 : f32 to vector<2x16x16xf32>
    %98 = arith.addf %96, %97 : vector<2x16x16xf32>
    %99 = math.sqrt %98 : vector<2x16x16xf32>
    %100 = arith.subf %59, %99 : vector<2x16x16xf32>
    %101 = math.absf %100 : vector<2x16x16xf32>
    %102 = vector.shape_cast %15 : vector<2x16x16xf32> to vector<1x2x16x16xf32>
    %cst_47 = arith.constant dense<0.000000e+00> : vector<1xf32>
    %103 = vector.multi_reduction <add>, %102, %cst_47 [1, 2, 3] : vector<1x2x16x16xf32> to vector<1xf32>
    %104 = vector.shape_cast %103 : vector<1xf32> to vector<1x1x1x1xf32>
    %105 = vector.extract %104[0, 0, 0, 0] : f32 from vector<1x1x1x1xf32>
    %106 = vector.shape_cast %101 : vector<2x16x16xf32> to vector<1x2x16x16xf32>
    %cst_48 = arith.constant dense<0.000000e+00> : vector<1xf32>
    %107 = vector.multi_reduction <add>, %106, %cst_48 [1, 2, 3] : vector<1x2x16x16xf32> to vector<1xf32>
    %108 = vector.shape_cast %107 : vector<1xf32> to vector<1x1x1x1xf32>
    %109 = vector.extract %108[0, 0, 0, 0] : f32 from vector<1x1x1x1xf32>
    %110 = vector.shape_cast %19 : vector<2x16x16xf32> to vector<1x2x16x16xf32>
    %cst_49 = arith.constant dense<0.000000e+00> : vector<1xf32>
    %111 = vector.multi_reduction <add>, %110, %cst_49 [1, 2, 3] : vector<1x2x16x16xf32> to vector<1xf32>
    %112 = vector.shape_cast %111 : vector<1xf32> to vector<1x1x1x1xf32>
    %113 = vector.extract %112[0, 0, 0, 0] : f32 from vector<1x1x1x1xf32>
    %114 = tpu.iota {dimensions = array<i32: 0>} : vector<8x128xi32>
    %c0_i32 = arith.constant 0 : i32
    %115 = vector.broadcast %c0_i32 : i32 to vector<8x128xi32>
    %116 = arith.cmpi eq, %114, %115 : vector<8x128xi32>
    %c1_i32_50 = arith.constant 1 : i32
    %117 = vector.broadcast %c1_i32_50 : i32 to vector<8x128xi32>
    %118 = arith.cmpi eq, %114, %117 : vector<8x128xi32>
    %c2_i32 = arith.constant 2 : i32
    %119 = vector.broadcast %c2_i32 : i32 to vector<8x128xi32>
    %120 = arith.cmpi eq, %114, %119 : vector<8x128xi32>
    %cst_51 = arith.constant 0.000000e+00 : f32
    %121 = vector.broadcast %113 : f32 to vector<8x128xf32>
    %122 = vector.broadcast %cst_51 : f32 to vector<8x128xf32>
    %123 = arith.select %120, %121, %122 : vector<8x128xi1>, vector<8x128xf32>
    %124 = vector.broadcast %109 : f32 to vector<8x128xf32>
    %125 = arith.select %118, %124, %123 : vector<8x128xi1>, vector<8x128xf32>
    %126 = vector.broadcast %105 : f32 to vector<8x128xf32>
    %127 = arith.select %116, %126, %125 : vector<8x128xi1>, vector<8x128xf32>
    %c0_52 = arith.constant 0 : index
    %c0_53 = arith.constant 0 : index
    %c0_54 = arith.constant 0 : index
    %128 = vector.load %arg3[%c0_52, %c0_53, %c0_54] : memref<1x8x128xf32, #tpu.memory_space<vmem>>, vector<1x8x128xf32>
    %129 = vector.shape_cast %128 : vector<1x8x128xf32> to vector<8x128xf32>
    %130 = vector.shape_cast %127 : vector<8x128xf32> to vector<1x8x128xf32>
    tpu.vector_store %arg3[%c0_52, %c0_53, %c0_54], %130 {strides = array<i32>} : memref<1x8x128xf32, #tpu.memory_space<vmem>>, vector<1x8x128xf32>,
    return
  }
  func.func @transform_0(%arg0: i32) -> (i32, i32, i32, i32) {
    %c0_i32 = arith.constant 0 : i32
    %c0_i32_0 = arith.constant 0 : i32
    %c0_i32_1 = arith.constant 0 : i32
    %c0_i32_2 = arith.constant 0 : i32
    return %arg0, %c0_i32, %c0_i32_0, %c0_i32_1 : i32, i32, i32, i32
  }
  func.func @transform_1(%arg0: i32) -> (i32, i32, i32, i32) {
    %c0_i32 = arith.constant 0 : i32
    %c0_i32_0 = arith.constant 0 : i32
    %c0_i32_1 = arith.constant 0 : i32
    %c0_i32_2 = arith.constant 0 : i32
    return %arg0, %c0_i32, %c0_i32_0, %c0_i32_1 : i32, i32, i32, i32
  }
  func.func @transform_2(%arg0: i32) -> (i32, i32, i32) {
    %c0_i32 = arith.constant 0 : i32
    %c0_i32_0 = arith.constant 0 : i32
    %c0_i32_1 = arith.constant 0 : i32
    return %arg0, %c0_i32, %c0_i32_0 : i32, i32, i32
  }
}

</mosaic_0001>

<bundles_post_ra>
// kernel: tpu_custom_call.1
= control target key start
LH: loop header
LB: loop body
LE: loop exit
PB: predicated region body
PF: predicated region fallthrough
CT: control target
= control target key end

     0   :  { %7 = vsyncpa [#allocation3], 0  ;;  %s1307_s0 = inlined_call_operand.hbm [shape: f32[2,1,16,16], index: 0, kind: input, shape index: {}]   ;;  %s1308_s1 = inlined_call_operand.hbm [shape: f32[2,1,16,16], index: 1, kind: input, shape index: {}]   ;;  %s1309_s2 = inlined_call_operand.hbm [shape: f32[1,8,128], index: 2, kind: output, shape index: {}]  }
   0x1   :  { %8 = vsyncpa [#allocation6], 0 }
   0x2   :  { %9 = vsyncpa [#allocation4], 0  ;;  %s763_s9 = smov [#allocation2]   ;;  %s691_s13 = scalar_lea.hbm %s1307_s0, 512 }
   0x3   :  { %s15_s10 = sshll.u32 %s763_s9, 4  ;;  %p692_p0 = scmp.ne.s32.totalorder %s1307_s0, %s691_s13  ;;  %s16_s10 = int_to_ptr.vmem [resolvable:$true] %s15_s10 }
   0x4   :  { %p695_p1 = scmp.lt.u32.totalorder %s691_s13, %s1307_s0 }
   0x6   :  { %p697_p2 = pnand %p695_p1, %p692_p0 }
   0x8   :  { %700 = shalt.err (!%p697_p2)
}
   0x9   :  { %s701_s18 = scalar_lea.vmem %s16_s10, 512  ;;  %p706_p4 = scmp.lt.s32.totalorder %s16_s10, %s16_s10 }
   0xa   :  { %p702_p3 = scmp.ne.s32.totalorder %s16_s10, %s701_s18  ;;  %p707_p5 = scmp.lt.s32.totalorder %s701_s18, %s701_s18 }
   0xc   :  { %p708_p6 = por %p707_p5, %p706_p4 }
   0xe   :  { %p709_p7 = pnand %p708_p6, %p702_p3 }
  0x10   :  { %712 = shalt.err (!%p709_p7)
}
  0x11   :  { %s764_s19 = smov 128   ;;  %s765_s20 = smov 8  }
  0x12   :  { %21 = dma.hbm_to_vmem [thread:$0]  %s1307_s0, 512, %s16_s10, [#allocation3], %s764_s19, %s764_s19, %s765_s20  }
  0x13   :  { %s766_s23 = smov [#allocation5]   ;;  %s713_s27 = scalar_lea.hbm %s1308_s1, 512 }
  0x14   :  { %s27_s24 = sshll.u32 %s766_s23, 4  ;;  %p714_p8 = scmp.ne.s32.totalorder %s1308_s1, %s713_s27  ;;  %s28_s24 = int_to_ptr.vmem [resolvable:$true] %s27_s24 }
  0x15   :  { %p717_p9 = scmp.lt.u32.totalorder %s713_s27, %s1308_s1 }
  0x17   :  { %p719_p10 = pnand %p717_p9, %p714_p8 }
  0x19   :  { %722 = shalt.err (!%p719_p10)
}
  0x1a   :  { %s723_s4 = scalar_lea.vmem %s28_s24, 512  ;;  %p728_p12 = scmp.lt.s32.totalorder %s28_s24, %s28_s24 }
  0x1b   :  { %p724_p11 = scmp.ne.s32.totalorder %s28_s24, %s723_s4  ;;  %p729_p13 = scmp.lt.s32.totalorder %s723_s4, %s723_s4 }
  0x1d   :  { %p730_p0 = por %p729_p13, %p728_p12 }
  0x1f   :  { %p731_p1 = pnand %p730_p0, %p724_p11 }
  0x21   :  { %734 = shalt.err (!%p731_p1)
}
  0x22   :  { %33 = dma.hbm_to_vmem [thread:$0]  %s1308_s1, 512, %s28_s24, [#allocation6], %s764_s19, %s764_s19, %s765_s20  }
  0x23   :  { %757 = dma.done.wait [#allocation3], 512  }
  0x24   :  { %758 = vsyncadd [#allocation3], 4294966784 }
  0x25   :  { %759 = dma.done.wait [#allocation6], 512  }
  0x26   :  { %760 = vsyncadd [#allocation6], 4294966784  ;;  %v48_v0 = vlaneseq  ;;  %v810_v1 = vld [vmem:[#allocation2] sm:$0xff]  ;;  %s767_s6 = smov 16   ;;  %v821_v4 = vld [vmem:[#allocation2 + $0x8] sm:$0xff]  ;;  %vm79_vm4 = vcmask 1047680  }
  0x27   :  { %v812_v2 = vld [vmem:[#allocation5] sm:$0xff]  ;;  %80 = vrot.lane.b32.xlu0 %v810_v1, %s767_s6  ;;  %v823_v5 = vld [vmem:[#allocation5 + $0x8] sm:$0xff]  ;;  %v194_v7 = vrot.slane %v810_v1, 7  ;;  %v196_v8 = vrot.slane %v821_v4, 7  ;;  %v182_v9 = vrot.slane %v810_v1, 1  ;;  %v184_v10 = vrot.slane %v821_v4, 1 }
  0x28   :  { %v815_v3 = vshrl.u32 %v48_v0, 7  ;;  %326 = vrot.lane.b32.xlu1 %v812_v2, %s767_s6  ;;  %v838_v11 = vld [vmem:[#allocation2 + $0x10] sm:$0xff]  ;;  %v840_v12 = vld [vmem:[#allocation2 + $0x18] sm:$0xff]  ;;  %v438_v14 = vrot.slane %v812_v2, 7  ;;  %v440_v15 = vrot.slane %v823_v5, 7  ;;  %v426_v17 = vrot.slane %v812_v2, 1 }
  0x29   :  { %v428_v18 = vrot.slane %v823_v5, 1  ;;  %v860_v21 = vld [vmem:[#allocation5 + $0x10] sm:$0xff]  ;;  %v862_v22 = vld [vmem:[#allocation5 + $0x18] sm:$0xff]  ;;  %v195_v27 = vrot.slane %v838_v11, 7  ;;  %v197_v28 = vrot.slane %v840_v12, 7  ;;  %v183_v32 = vrot.slane %v838_v11, 1 }
  0x2a   :  { %v826_v6 = vadd.s32 8, %v815_v3  ;;  %vm148_vm0 = vcmp.lt.s32.totalorder %v815_v3, 1  ;;  %vm169_vm1 = vcmp.lt.s32.totalorder %v815_v3, 7  ;;  %vm57_vm3 = vcmp.ge.s32.totalorder %v815_v3, 1  ;;  %s768_s1 = smov 127   ;;  %s769_s7 = smov 113  }
  0x2b   :  { %83 = vrot.lane.b32.xlu0 %v821_v4, %s767_s6  ;;  %v188_v13 = vsel %vm169_vm1, %v184_v10, %v182_v9  ;;  %v200_v16 = vsel %vm148_vm0, %v196_v8, %v194_v7  ;;  %v186_v19 = vsel %vm169_vm1, %v182_v9, %v184_v10  ;;  %v198_v24 = vsel %vm148_vm0, %v194_v7, %v196_v8  ;;  %s770_s11 = smov [#allocation7]  }
  0x2c   :  { %329 = vrot.lane.b32.xlu1 %v823_v5, %s767_s6  ;;  %vm56_vm2 = vcmp.lt.s32.totalorder %v826_v6, 15  ;;  %v202_v23 = vsel %vm57_vm3, %v200_v16, 0.0  ;;  %v444_v25 = vsel %vm148_vm0, %v440_v15, %v438_v14  ;;  %v432_v26 = vsel %vm169_vm1, %v428_v18, %v426_v17  ;;  %s643_s12 = sshll.u32 %s770_s11, 4  ;;  %s644_s12 = int_to_ptr.vmem [resolvable:$true] %s643_s12 }
  0x2d   :  { %v191_v20 = vsel %vm56_vm2, %v188_v13, 0.0  ;;  %v439_v29 = vrot.slane %v860_v21, 7  ;;  %v441_v30 = vrot.slane %v862_v22, 7  ;;  %v430_v31 = vsel %vm169_vm1, %v426_v17, %v428_v18  ;;  %s735_s13 = scalar_lea.vmem %s644_s12, 128  ;;  %p740_p3 = scmp.lt.s32.totalorder %s644_s12, %s644_s12 }
  0x2e   :  { %v883_v33 = vsub.f32 %v186_v19, %v202_v23  ;;  %v885_v34 = vsub.f32 %v191_v20, %v198_v24  ;;  %v446_v35 = vsel %vm57_vm3, %v444_v25, 0.0  ;;  %v435_v36 = vsel %vm56_vm2, %v432_v26, 0.0  ;;  %p736_p2 = scmp.ne.s32.totalorder %s644_s12, %s735_s13  ;;  %p741_p4 = scmp.lt.s32.totalorder %s735_s13, %s735_s13 }
  0x2f   :  { %86 = vrot.lane.b32.xlu0 %v838_v11, %s767_s6  ;;  %v442_v37 = vsel %vm148_vm0, %v438_v14, %v440_v15  ;;  %v185_v38 = vrot.slane %v840_v12, 1  ;;  %v427_v39 = vrot.slane %v860_v21, 1  ;;  %v429_v40 = vrot.slane %v862_v22, 1 }
  0x30   :  { %89 = vrot.lane.b32.xlu1 %v840_v12, %s767_s6  ;;  %v201_v41 = vsel %vm148_vm0, %v197_v28, %v195_v27  ;;  %v445_v42 = vsel %vm148_vm0, %v441_v30, %v439_v29  ;;  %v904_v43 = vsub.f32 %v430_v31, %v446_v35  ;;  %v906_v44 = vsub.f32 %v435_v36, %v442_v37  ;;  %p742_p5 = por %p741_p4, %p740_p3 }
  0x31   :  { %v187_v45 = vsel %vm169_vm1, %v183_v32, %v185_v38  ;;  %v204_v46 = vsel %vm57_vm3, %v201_v41, 0.0  ;;  %v431_v47 = vsel %vm169_vm1, %v427_v39, %v429_v40  ;;  %v448_v48 = vsel %vm57_vm3, %v445_v42, 0.0 }
  0x32   :  { %v189_v49 = vsel %vm169_vm1, %v185_v38, %v183_v32  ;;  %v433_v50 = vsel %vm169_vm1, %v429_v40, %v427_v39  ;;  %v924_v51 = vsub.f32 %v187_v45, %v204_v46  ;;  %v926_v52 = vsub.f32 %v431_v47, %v448_v48  ;;  %p743_p6 = pnand %p742_p5, %p736_p2 }
  0x33   :  { %332 = vrot.lane.b32.xlu0 %v860_v21, %s767_s6  ;;  %v193_v53 = vsel %vm56_vm2, %v189_v49, 0.0  ;;  %v199_v54 = vsel %vm148_vm0, %v195_v27, %v197_v28  ;;  %v437_v55 = vsel %vm56_vm2, %v433_v50, 0.0  ;;  %v443_v56 = vsel %vm148_vm0, %v439_v29, %v441_v30 }
  0x34   :  { %335 = vrot.lane.b32.xlu1 %v862_v22, %s767_s6  ;;  %v940_v57 = vsub.f32 %v193_v53, %v199_v54  ;;  %v942_v58 = vsub.f32 %v437_v55, %v443_v56  ;;  %vm578_vm5 = vcmask 130048  }
  0x37   :  { %210 = vrot.lane.b32.xlu0 %v883_v33, %s767_s6 }
  0x38   :  { %213 = vrot.lane.b32.xlu1 %v885_v34, %s767_s6 }
  0x3b   :  { %454 = vrot.lane.b32.xlu0 %v904_v43, %s767_s6 }
  0x3c   :  { %457 = vrot.lane.b32.xlu1 %v906_v44, %s767_s6 }
  0x3f   :  { %216 = vrot.lane.b32.xlu0 %v924_v51, %s767_s6 }
  0x40   :  { %460 = vrot.lane.b32.xlu1 %v926_v52, %s767_s6 }
  0x43   :  { %219 = vrot.lane.b32.xlu0 %v940_v57, %s767_s6 }
  0x44   :  { %463 = vrot.lane.b32.xlu1 %v942_v58, %s767_s6 }
  0x99   :  { %v81_v59 = vpop.permute.xlu0 %80 }
  0x9a   :  { %v327_v60 = vpop.permute.xlu1 %326  ;;  %v82_v61 = vsel %vm79_vm4, %v81_v59, %v810_v1 }
  0x9b   :  { %92 = vrot.lane.b32.xlu0 %v82_v61, %s767_s6  ;;  %v328_v62 = vsel %vm79_vm4, %v327_v60, %v812_v2 }
  0x9d   :  { %v84_v63 = vpop.permute.xlu0 %83 }
  0x9e   :  { %v330_v7 = vpop.permute.xlu1 %329  ;;  %v85_v8 = vsel %vm79_vm4, %v84_v63, %v821_v4 }
  0x9f   :  { %94 = vrot.lane.b32.xlu1 %v85_v8, %s767_s6  ;;  %338 = vrot.lane.b32.xlu0 %v328_v62, %s767_s6  ;;  %v331_v9 = vsel %vm79_vm4, %v330_v7, %v823_v5 }
  0xa1   :  { %v87_v10 = vpop.permute.xlu0 %86 }
  0xa2   :  { %v90_v13 = vpop.permute.xlu1 %89  ;;  %v88_v14 = vsel %vm79_vm4, %v87_v10, %v838_v11 }
  0xa3   :  { %340 = vrot.lane.b32.xlu1 %v331_v9, %s767_s6  ;;  %96 = vrot.lane.b32.xlu0 %v88_v14, %s767_s6  ;;  %v91_v15 = vsel %vm79_vm4, %v90_v13, %v840_v12 }
  0xa5   :  { %v333_v16 = vpop.permute.xlu0 %332 }
  0xa6   :  { %v336_v17 = vpop.permute.xlu1 %335  ;;  %v334_v18 = vsel %vm79_vm4, %v333_v16, %v860_v21 }
  0xa7   :  { %98 = vrot.lane.b32.xlu1 %v91_v15, %s767_s6  ;;  %342 = vrot.lane.b32.xlu0 %v334_v18, %s767_s6  ;;  %v337_v19 = vsel %vm79_vm4, %v336_v17, %v862_v22 }
  0xa9   :  { %v211_v20 = vpop.permute.xlu0 %210 }
  0xaa   :  { %v214_v23 = vpop.permute.xlu1 %213  ;;  %v212_v24 = vsel %vm79_vm4, %v211_v20, %v883_v33 }
  0xab   :  { %344 = vrot.lane.b32.xlu1 %v337_v19, %s767_s6  ;;  %222 = vrot.lane.b32.xlu0 %v212_v24, %s767_s6  ;;  %v215_v25 = vsel %vm79_vm4, %v214_v23, %v885_v34 }
  0xad   :  { %v455_v26 = vpop.permute.xlu0 %454 }
  0xae   :  { %v458_v27 = vpop.permute.xlu1 %457  ;;  %v456_v28 = vsel %vm79_vm4, %v455_v26, %v904_v43  ;;  %v68_v26 = vadd.f32 0.001, %v823_v5 }
  0xaf   :  { %224 = vrot.lane.b32.xlu1 %v215_v25, %s767_s6  ;;  %466 = vrot.lane.b32.xlu0 %v456_v28, %s767_s6  ;;  %v459_v29 = vsel %vm79_vm4, %v458_v27, %v906_v44  ;;  %v67_v25 = vadd.f32 0.001, %v812_v2  ;;  %v69_v27 = vadd.f32 0.001, %v860_v21  ;;  %v70_v28 = vadd.f32 0.001, %v862_v22 }
  0xb1   :  { %v217_v30 = vpop.permute.xlu0 %216  ;;  %667 = vrcp.f32 %v67_v25 }
  0xb2   :  { %v461_v31 = vpop.permute.xlu1 %460  ;;  %v218_v32 = vsel %vm79_vm4, %v217_v30, %v924_v51  ;;  %669 = vrcp.f32 %v68_v26  ;;  %v60_v30 = vsub.f32 %v821_v4, %v823_v5 }
  0xb3   :  { %468 = vrot.lane.b32.xlu1 %v459_v29, %s767_s6  ;;  %226 = vrot.lane.b32.xlu0 %v218_v32, %s767_s6  ;;  %v462_v35 = vsel %vm79_vm4, %v461_v31, %v926_v52  ;;  %671 = vrcp.f32 %v69_v27  ;;  %v59_v29 = vsub.f32 %v810_v1, %v812_v2  ;;  %v61_v31 = vsub.f32 %v838_v11, %v860_v21 }
  0xb4   :  { %673 = vrcp.f32 %v70_v28 }
  0xb5   :  { %v220_v36 = vpop.permute.xlu0 %219 }
  0xb6   :  { %v464_v37 = vpop.permute.xlu1 %463  ;;  %v221_v38 = vsel %vm79_vm4, %v220_v36, %v940_v57  ;;  %v64_v36 = vand.u32 2147483647, %v60_v30 }
  0xb7   :  { %470 = vrot.lane.b32.xlu1 %v462_v35, %s767_s6  ;;  %228 = vrot.lane.b32.xlu0 %v221_v38, %s767_s6  ;;  %v465_v39 = vsel %vm79_vm4, %v464_v37, %v942_v58  ;;  %v63_v35 = vand.u32 2147483647, %v59_v29  ;;  %v62_v38 = vsub.f32 %v840_v12, %v862_v22 }
  0xbb   :  { %472 = vrot.lane.b32.xlu1 %v465_v39, %s767_s6  ;;  %v668_v32 = vpop.eup %667  ;;  %v65_v39 = vand.u32 2147483647, %v61_v31 }
  0xbc   :  { %v670_v37 = vpop.eup %669 }
 0x10d   :  { %v93_v40 = vpop.permute.xlu0 %92 }
 0x10e   :  { %v100_v41 = vsel %vm79_vm4, %v93_v40, %v810_v1  ;;  %v579_v40 = vsel %vm578_vm5, %v63_v35, 0.0  ;;  %v580_v1 = vsel %vm578_vm5, %v64_v36, 0.0 }
 0x10f   :  { %108 = vrot.lane.b32.xlu0 %v100_v41, %s768_s1 }
 0x111   :  { %v95_v42 = vpop.permute.xlu1 %94  ;;  %v339_v45 = vpop.permute.xlu0 %338 }
 0x112   :  { %v101_v46 = vsel %vm79_vm4, %v95_v42, %v821_v4  ;;  %v346_v47 = vsel %vm79_vm4, %v339_v45, %v812_v2  ;;  %v75_v2 = vmul.f32 %v668_v32, %v63_v35  ;;  %v672_v4 = vpop.eup %671  ;;  %v581_v42 = vadd.f32 %v580_v1, %v579_v40 }
 0x113   :  { %110 = vrot.lane.b32.xlu1 %v101_v46, %s768_s1  ;;  %124 = vrot.lane.b32.xlu0 %v100_v41, %s769_s7  ;;  %v76_v41 = vmul.f32 %v670_v37, %v64_v36 }
 0x114   :  { %v611_v45 = vsel %vm578_vm5, %v75_v2, 0.0 }
 0x115   :  { %v341_v48 = vpop.permute.xlu1 %340  ;;  %v97_v50 = vpop.permute.xlu0 %96 }
 0x116   :  { %v347_v49 = vsel %vm79_vm4, %v341_v48, %v823_v5  ;;  %v102_v53 = vsel %vm79_vm4, %v97_v50, %v838_v11  ;;  %v66_v5 = vand.u32 2147483647, %v62_v38  ;;  %v582_v11 = vsel %vm578_vm5, %v65_v39, 0.0 }
 0x117   :  { %126 = vrot.lane.b32.xlu1 %v101_v46, %s769_s7  ;;  %354 = vrot.lane.b32.xlu0 %v346_v47, %s768_s1  ;;  %v612_v46 = vsel %vm578_vm5, %v76_v41, 0.0 }
 0x118   :  { %v584_v48 = vsel %vm578_vm5, %v66_v5, 0.0 }
 0x119   :  { %v99_v54 = vpop.permute.xlu1 %98  ;;  %v343_v56 = vpop.permute.xlu0 %342 }
 0x11a   :  { %v103_v55 = vsel %vm79_vm4, %v99_v54, %v840_v12  ;;  %v348_v59 = vsel %vm79_vm4, %v343_v56, %v860_v21  ;;  %v77_v21 = vmul.f32 %v672_v4, %v65_v39  ;;  %v583_v12 = vadd.f32 %v582_v11, %v581_v42 }
 0x11b   :  { %356 = vrot.lane.b32.xlu1 %v347_v49, %s768_s1  ;;  %370 = vrot.lane.b32.xlu0 %v346_v47, %s769_s7  ;;  %v674_v47 = vpop.eup %673  ;;  %v254_v42 = vmul.f32 2.0, %v883_v33 }
 0x11c   :  { %v614_v50 = vsel %vm578_vm5, %v77_v21, 0.0 }
 0x11d   :  { %v345_v60 = vpop.permute.xlu1 %344  ;;  %v223_v61 = vpop.permute.xlu0 %222 }
 0x11e   :  { %v349_v62 = vsel %vm79_vm4, %v345_v60, %v862_v22  ;;  %v230_v8 = vsel %vm79_vm4, %v223_v61, %v883_v33  ;;  %v613_v22 = vadd.f32 %v612_v46, %v611_v45  ;;  %v255_v46 = vmul.f32 2.0, %v885_v34 }
 0x11f   :  { %372 = vrot.lane.b32.xlu1 %v347_v49, %s769_s7  ;;  %112 = vrot.lane.b32.xlu0 %v102_v53, %s768_s1  ;;  %v78_v49 = vmul.f32 %v674_v47, %v66_v5 }
 0x120   :  { %v615_v54 = vadd.f32 %v614_v50, %v613_v22 }
 0x121   :  { %v225_v63 = vpop.permute.xlu1 %224  ;;  %v467_v7 = vpop.permute.xlu0 %466 }
 0x122   :  { %v231_v9 = vsel %vm79_vm4, %v225_v63, %v885_v34  ;;  %v474_v10 = vsel %vm79_vm4, %v467_v7, %v904_v43 }
 0x123   :  { %114 = vrot.lane.b32.xlu1 %v103_v55, %s768_s1  ;;  %128 = vrot.lane.b32.xlu0 %v102_v53, %s769_s7  ;;  %v585_v53 = vadd.f32 %v584_v48, %v583_v12  ;;  %v1122_v48 = vmul.f32 2.0, %v904_v43  ;;  %v1137_v43 = vmul.f32 2.0, %v924_v51 }
 0x125   :  { %v469_v13 = vpop.permute.xlu1 %468  ;;  %v227_v14 = vpop.permute.xlu0 %226 }
 0x126   :  { %v475_v15 = vsel %vm79_vm4, %v469_v13, %v906_v44  ;;  %v232_v16 = vsel %vm79_vm4, %v227_v14, %v924_v51 }
 0x127   :  { %130 = vrot.lane.b32.xlu1 %v103_v55, %s769_s7  ;;  %358 = vrot.lane.b32.xlu0 %v348_v59, %s768_s1  ;;  %v616_v55 = vsel %vm578_vm5, %v78_v49, 0.0  ;;  %v1125_v49 = vmul.f32 2.0, %v906_v44 }
 0x128   :  { %v617_v56 = vadd.f32 %v616_v55, %v615_v54 }
 0x129   :  { %v471_v17 = vpop.permute.xlu1 %470  ;;  %v229_v19 = vpop.permute.xlu0 %228 }
 0x12a   :  { %v476_v18 = vsel %vm79_vm4, %v471_v17, %v926_v52  ;;  %v233_v20 = vsel %vm79_vm4, %v229_v19, %v940_v57 }
 0x12b   :  { %360 = vrot.lane.b32.xlu1 %v349_v62, %s768_s1  ;;  %374 = vrot.lane.b32.xlu0 %v348_v59, %s769_s7 }
 0x12d   :  { %v473_v23 = vpop.permute.xlu1 %472 }
 0x12e   :  { %v477_v24 = vsel %vm79_vm4, %v473_v23, %v942_v58 }
 0x12f   :  { %376 = vrot.lane.b32.xlu1 %v349_v62, %s769_s7  ;;  %238 = vrot.lane.b32.xlu0 %v230_v8, %s769_s7 }
 0x133   :  { %240 = vrot.lane.b32.xlu1 %v231_v9, %s769_s7  ;;  %482 = vrot.lane.b32.xlu0 %v474_v10, %s769_s7 }
 0x137   :  { %484 = vrot.lane.b32.xlu1 %v475_v15, %s769_s7  ;;  %242 = vrot.lane.b32.xlu0 %v232_v16, %s769_s7 }
 0x13b   :  { %262 = vrot.lane.b32.xlu1 %v230_v8, %s768_s1  ;;  %264 = vrot.lane.b32.xlu0 %v231_v9, %s768_s1  ;;  %v1081_v9 = vand.u32 127, %v48_v0 }
 0x13d   :  { %vm54_vm6 = vcmp.ge.s32.totalorder %v1081_v9, 1  ;;  %vm53_vm7 = vcmp.lt.s32.totalorder %v1081_v9, 15 }
 0x13f   :  { %486 = vrot.lane.b32.xlu1 %v476_v18, %s769_s7  ;;  %506 = vrot.lane.b32.xlu0 %v474_v10, %s768_s1 }
 0x143   :  { %508 = vrot.lane.b32.xlu1 %v475_v15, %s768_s1  ;;  %244 = vrot.lane.b32.xlu0 %v233_v20, %s769_s7 }
 0x147   :  { %266 = vrot.lane.b32.xlu1 %v232_v16, %s768_s1  ;;  %488 = vrot.lane.b32.xlu0 %v477_v24, %s769_s7 }
 0x14b   :  { %510 = vrot.lane.b32.xlu1 %v476_v18, %s768_s1  ;;  %268 = vrot.lane.b32.xlu0 %v233_v20, %s768_s1 }
 0x14f   :  { %512 = vrot.lane.b32.xlu1 %v477_v24, %s768_s1 }
 0x16a   :  { %586 = vadd.xlane.f32.xlu0 %v585_v53 }
 0x16e   :  { %618 = vadd.xlane.f32.xlu0 %v617_v56 }
 0x181   :  { %v109_v59 = vpop.permute.xlu0 %108 }
 0x182   :  { %v120_v0 = vsel %vm53_vm7, %v109_v59, 0.0 }
 0x185   :  { %v111_v60 = vpop.permute.xlu1 %110  ;;  %v125_v61 = vpop.permute.xlu0 %124 }
 0x186   :  { %v121_v15 = vsel %vm53_vm7, %v111_v60, 0.0  ;;  %v136_v16 = vsel %vm54_vm6, %v125_v61, 0.0 }
 0x187   :  { %v140_v20 = vsub.f32 %v120_v0, %v136_v16 }
 0x189   :  { %v127_v62 = vpop.permute.xlu1 %126  ;;  %v355_v63 = vpop.permute.xlu0 %354  ;;  %v144_v30 = vrot.slane %v140_v20, 7  ;;  %v165_v1 = vrot.slane %v140_v20, 1  ;;  %v157_v5 = vmul.f32 2.0, %v140_v20 }
 0x18a   :  { %v137_v10 = vsel %vm54_vm6, %v127_v62, 0.0  ;;  %v366_v31 = vsel %vm53_vm7, %v355_v63, 0.0 }
 0x18b   :  { %v141_v17 = vsub.f32 %v121_v15, %v137_v10 }
 0x18d   :  { %v357_v7 = vpop.permute.xlu1 %356  ;;  %v371_v8 = vpop.permute.xlu0 %370  ;;  %v146_v24 = vrot.slane %v141_v17, 7  ;;  %v167_v36 = vrot.slane %v141_v17, 1  ;;  %v158_v40 = vmul.f32 2.0, %v141_v17 }
 0x18e   :  { %v367_v25 = vsel %vm53_vm7, %v357_v7, 0.0  ;;  %v382_v26 = vsel %vm54_vm6, %v371_v8, 0.0  ;;  %v1147_v7 = vmul.f32 2.0, %v926_v52 }
 0x18f   :  { %v1103_v32 = vsub.f32 %v366_v31, %v382_v26  ;;  %v151_v35 = vsel %vm148_vm0, %v146_v24, %v144_v30  ;;  %v149_v2 = vsel %vm148_vm0, %v144_v30, %v146_v24  ;;  %v172_v47 = vsel %vm169_vm1, %v167_v36, %v165_v1 }
 0x190   :  { %v153_v4 = vsel %vm57_vm3, %v151_v35, 0.0  ;;  %v162_v22 = vadd.f32 %v158_v40, %v149_v2  ;;  %v175_v44 = vsel %vm56_vm2, %v172_v47, 0.0  ;;  %v1167_v26 = vmul.f32 2.0, %v940_v57 }
 0x191   :  { %v373_v13 = vpop.permute.xlu1 %372  ;;  %v113_v14 = vpop.permute.xlu0 %112  ;;  %v390_v41 = vrot.slane %v1103_v32, 7  ;;  %v161_v33 = vadd.f32 %v157_v5, %v153_v4  ;;  %v402_v59 = vmul.f32 2.0, %v1103_v32  ;;  %v410_v60 = vrot.slane %v1103_v32, 1 }
 0x192   :  { %v383_v23 = vsel %vm54_vm6, %v373_v13, 0.0  ;;  %v122_v53 = vsel %vm53_vm7, %v113_v14, 0.0  ;;  %v170_v13 = vsel %vm169_vm1, %v165_v1, %v167_v36  ;;  %v179_v15 = vadd.f32 %v175_v44, %v162_v22 }
 0x193   :  { %v1099_v27 = vsub.f32 %v367_v25, %v383_v23  ;;  %v178_v14 = vadd.f32 %v170_v13, %v161_v33 }
 0x194   :  { %v283_v36 = vmul.f32 %v179_v15, %v179_v15 }
 0x195   :  { %v115_v18 = vpop.permute.xlu1 %114  ;;  %v129_v19 = vpop.permute.xlu0 %128  ;;  %v392_v37 = vrot.slane %v1099_v27, 7  ;;  %v412_v50 = vrot.slane %v1099_v27, 1  ;;  %v403_v61 = vmul.f32 2.0, %v1099_v27  ;;  %v1170_v27 = vmul.f32 2.0, %v942_v58 }
 0x196   :  { %v123_v34 = vsel %vm53_vm7, %v115_v18, 0.0  ;;  %v138_v54 = vsel %vm54_vm6, %v129_v19, 0.0  ;;  %v282_v35 = vmul.f32 %v178_v14, %v178_v14 }
 0x197   :  { %v396_v12 = vsel %vm148_vm0, %v392_v37, %v390_v41  ;;  %v394_v51 = vsel %vm148_vm0, %v390_v41, %v392_v37  ;;  %v142_v8 = vsub.f32 %v122_v53, %v138_v54  ;;  %v416_v17 = vsel %vm169_vm1, %v412_v50, %v410_v60 }
 0x198   :  { %v398_v56 = vsel %vm57_vm3, %v396_v12, 0.0  ;;  %v407_v20 = vadd.f32 %v403_v61, %v394_v51  ;;  %v419_v31 = vsel %vm56_vm2, %v416_v17, 0.0  ;;  %v414_v57 = vsel %vm169_vm1, %v410_v60, %v412_v50 }
 0x199   :  { %v131_v28 = vpop.permute.xlu1 %130  ;;  %v359_v29 = vpop.permute.xlu0 %358  ;;  %v406_v16 = vadd.f32 %v402_v59, %v398_v56  ;;  %v166_v37 = vrot.slane %v142_v8, 1 }
 0x19a   :  { %v139_v11 = vsel %vm54_vm6, %v131_v28, 0.0  ;;  %v368_v52 = vsel %vm53_vm7, %v359_v29, 0.0  ;;  %v145_v28 = vrot.slane %v142_v8, 7  ;;  %v423_v5 = vadd.f32 %v419_v31, %v407_v20 }
 0x19b   :  { %v1134_v55 = vsub.f32 %v123_v34, %v139_v11 }
 0x19d   :  { %v361_v38 = vpop.permute.xlu1 %360  ;;  %v375_v39 = vpop.permute.xlu0 %374  ;;  %v147_v0 = vrot.slane %v1134_v55, 7  ;;  %v168_v58 = vrot.slane %v1134_v55, 1  ;;  %v160_v11 = vmul.f32 2.0, %v1134_v55 }
 0x19e   :  { %v369_v18 = vsel %vm53_vm7, %v361_v38, 0.0  ;;  %v384_v19 = vsel %vm54_vm6, %v375_v39, 0.0  ;;  %v422_v38 = vadd.f32 %v414_v57, %v406_v16 }
 0x19f   :  { %v1178_v32 = vsub.f32 %v368_v52, %v384_v19  ;;  %v152_v39 = vsel %vm148_vm0, %v147_v0, %v145_v28  ;;  %v150_v50 = vsel %vm148_vm0, %v145_v28, %v147_v0  ;;  %v173_v34 = vsel %vm169_vm1, %v168_v58, %v166_v37 }
 0x1a0   :  { %v526_v53 = vmul.f32 %v422_v38, %v422_v38  ;;  %v177_v17 = vsel %vm56_vm2, %v173_v34, 0.0 }
 0x1a1   :  { %v377_v21 = vpop.permute.xlu1 %376  ;;  %v239_v45 = vpop.permute.xlu0 %238  ;;  %v391_v12 = vrot.slane %v1178_v32, 7  ;;  %v404_v14 = vmul.f32 2.0, %v1178_v32  ;;  %v411_v28 = vrot.slane %v1178_v32, 1 }
 0x1a2   :  { %v385_v10 = vsel %vm54_vm6, %v377_v21, 0.0  ;;  %v250_v29 = vsel %vm54_vm6, %v239_v45, 0.0 }
 0x1a3   :  { %v1164_v23 = vsub.f32 %v369_v18, %v385_v10  ;;  %v258_v1 = vadd.f32 %v254_v42, %v250_v29  ;;  %v155_v42 = vsel %vm57_vm3, %v152_v39, 0.0 }
 0x1a5   :  { %v241_v62 = vpop.permute.xlu1 %240  ;;  %v483_v63 = vpop.permute.xlu0 %482  ;;  %v393_v40 = vrot.slane %v1164_v23, 7  ;;  %v413_v15 = vrot.slane %v1164_v23, 1 }
 0x1a6   :  { %v251_v30 = vsel %vm54_vm6, %v241_v62, 0.0  ;;  %v494_v21 = vsel %vm54_vm6, %v483_v63, 0.0  ;;  %v527_v63 = vmul.f32 %v423_v5, %v423_v5 }
 0x1a7   :  { %v259_v2 = vadd.f32 %v255_v46, %v251_v30  ;;  %v159_v46 = vmul.f32 2.0, %v142_v8  ;;  %v502_v54 = vadd.f32 %v1122_v48, %v494_v21  ;;  %v397_v60 = vsel %vm148_vm0, %v393_v40, %v391_v12 }
 0x1a8   :  { %v164_v8 = vadd.f32 %v160_v11, %v150_v50  ;;  %v171_v48 = vsel %vm169_vm1, %v166_v37, %v168_v58  ;;  %v400_v16 = vsel %vm57_vm3, %v397_v60, 0.0  ;;  %v417_v32 = vsel %vm169_vm1, %v413_v15, %v411_v28 }
 0x1a9   :  { %v485_v24 = vpop.permute.xlu1 %484  ;;  %v243_v25 = vpop.permute.xlu0 %242  ;;  %v163_v51 = vadd.f32 %v159_v46, %v155_v42  ;;  %v408_v58 = vadd.f32 %v404_v14, %v400_v16  ;;  %v415_v21 = vsel %vm169_vm1, %v411_v28, %v413_v15 }
 0x1aa   :  { %v495_v61 = vsel %vm54_vm6, %v485_v24, 0.0  ;;  %v252_v52 = vsel %vm54_vm6, %v243_v25, 0.0  ;;  %v395_v25 = vsel %vm148_vm0, %v391_v12, %v393_v40 }
 0x1ab   :  { %v503_v0 = vadd.f32 %v1125_v49, %v495_v61  ;;  %v180_v31 = vadd.f32 %v171_v48, %v163_v51  ;;  %v181_v49 = vadd.f32 %v177_v17, %v164_v8  ;;  %v424_v12 = vadd.f32 %v415_v21, %v408_v58 }
 0x1ad   :  { %v263_v41 = vpop.permute.xlu1 %262  ;;  %v265_v4 = vpop.permute.xlu0 %264 }
 0x1ae   :  { %v274_v45 = vsel %vm53_vm7, %v263_v41, 0.0  ;;  %v275_v47 = vsel %vm53_vm7, %v265_v4, 0.0  ;;  %v284_v4 = vmul.f32 %v180_v31, %v180_v31 }
 0x1af   :  { %v278_v22 = vadd.f32 %v274_v45, %v258_v1  ;;  %v279_v33 = vadd.f32 %v275_v47, %v259_v2 }
 0x1b1   :  { %v286_v55 = vmul.f32 %v278_v22, %v278_v22  ;;  %v287_v44 = vmul.f32 %v279_v33, %v279_v33  ;;  %v487_v56 = vpop.permute.xlu1 %486  ;;  %v507_v59 = vpop.permute.xlu0 %506  ;;  %v421_v22 = vsel %vm56_vm2, %v417_v32, 0.0 }
 0x1b2   :  { %v518_v62 = vsel %vm53_vm7, %v507_v59, 0.0  ;;  %v496_v39 = vsel %vm54_vm6, %v487_v56, 0.0  ;;  %v528_v56 = vmul.f32 %v424_v12, %v424_v12  ;;  %v285_v59 = vmul.f32 %v181_v49, %v181_v49 }
 0x1b3   :  { %v291_v10 = vadd.f32 %v287_v44, %v283_v36  ;;  %v522_v13 = vadd.f32 %v518_v62, %v502_v54  ;;  %v290_v18 = vadd.f32 %v286_v55, %v282_v35  ;;  %v405_v36 = vmul.f32 2.0, %v1164_v23 }
 0x1b4   :  { %v260_v35 = vadd.f32 %v1137_v43, %v252_v52  ;;  %v504_v47 = vadd.f32 %v1147_v7, %v496_v39 }
 0x1b5   :  { %v530_v19 = vmul.f32 %v522_v13, %v522_v13  ;;  %v509_v20 = vpop.permute.xlu1 %508  ;;  %v245_v24 = vpop.permute.xlu0 %244  ;;  %v1219_v29 = vadd.f32 1e-08, %v291_v10  ;;  %v1229_v38 = vadd.f32 1e-08, %v290_v18  ;;  %v409_v45 = vadd.f32 %v405_v36, %v395_v25 }
 0x1b6   :  { %v519_v30 = vsel %vm53_vm7, %v509_v20, 0.0  ;;  %v253_v40 = vsel %vm54_vm6, %v245_v24, 0.0 }
 0x1b7   :  { %v534_v57 = vadd.f32 %v530_v19, %v526_v53  ;;  %v523_v37 = vadd.f32 %v519_v30, %v503_v0  ;;  %675 = vrsqrt.f32 %v1219_v29  ;;  %v261_v42 = vadd.f32 %v1167_v26, %v253_v40 }
 0x1b8   :  { %v425_v60 = vadd.f32 %v421_v22, %v409_v45  ;;  %vm307_vm8 = vcmp.eq.f32.partialorder %v1219_v29, inf  ;;  %vm300_vm12 = vcmp.eq.f32.partialorder %v1229_v38, inf  ;;  %v310_v25 = vand.u32 2147483648, %v1219_v29 }
 0x1b9   :  { %v1233_v1 = vadd.f32 1e-08, %v534_v57  ;;  %v531_v23 = vmul.f32 %v523_v37, %v523_v37  ;;  %v267_v2 = vpop.permute.xlu1 %266  ;;  %v489_v41 = vpop.permute.xlu0 %488  ;;  %vm309_vm13 = vcmp.eq.f32.partialorder %v1219_v29, 0.0  ;;  %vm302_vm15 = vcmp.eq.f32.partialorder %v1229_v38, 0.0 }
 0x1ba   :  { %v276_v43 = vsel %vm53_vm7, %v267_v2, 0.0  ;;  %v497_v34 = vsel %vm54_vm6, %v489_v41, 0.0  ;;  %v529_v0 = vmul.f32 %v425_v60, %v425_v60 }
 0x1bb   :  { %677 = vrsqrt.f32 %v1233_v1  ;;  %v535_v5 = vadd.f32 %v531_v23, %v527_v63  ;;  %v280_v11 = vadd.f32 %v276_v43, %v260_v35  ;;  %v505_v61 = vadd.f32 %v1170_v27, %v497_v34 }
 0x1bc   :  { %679 = vrsqrt.f32 %v1229_v38  ;;  %vm544_vm9 = vcmp.eq.f32.partialorder %v1233_v1, inf  ;;  %v547_v35 = vand.u32 2147483648, %v1233_v1  ;;  %vm546_vm14 = vcmp.eq.f32.partialorder %v1233_v1, 0.0 }
 0x1bd   :  { %v539_v33 = vadd.f32 1e-08, %v535_v5  ;;  %v288_v46 = vmul.f32 %v280_v11, %v280_v11  ;;  %v511_v50 = vpop.permute.xlu1 %510  ;;  %v269_v53 = vpop.permute.xlu0 %268  ;;  %v303_v23 = vand.u32 2147483648, %v1229_v38 }
 0x1be   :  { %v520_v54 = vsel %vm53_vm7, %v511_v50, 0.0  ;;  %v277_v7 = vsel %vm53_vm7, %v269_v53, 0.0 }
 0x1bf   :  { %681 = vrsqrt.f32 %v539_v33  ;;  %v292_v6 = vadd.f32 %v288_v46, %v284_v4  ;;  %v524_v55 = vadd.f32 %v520_v54, %v504_v47  ;;  %v281_v44 = vadd.f32 %v277_v7, %v261_v42 }
 0x1c0   :  { %vm551_vm10 = vcmp.eq.f32.partialorder %v539_v33, inf  ;;  %v554_v31 = vand.u32 2147483648, %v539_v33  ;;  %vm553_vm11 = vcmp.eq.f32.partialorder %v539_v33, 0.0 }
 0x1c1   :  { %v1254_v26 = vadd.f32 1e-08, %v292_v6  ;;  %v532_v62 = vmul.f32 %v524_v55, %v524_v55  ;;  %v289_v63 = vmul.f32 %v281_v44, %v281_v44  ;;  %v513_v51 = vpop.permute.xlu1 %512  ;;  %v676_v14 = vpop.eup %675 }
 0x1c2   :  { %v521_v8 = vsel %vm53_vm7, %v513_v51, 0.0  ;;  %v306_v9 = vmul.f32 %v676_v14, %v1219_v29 }
 0x1c3   :  { %683 = vrsqrt.f32 %v1254_v26  ;;  %v536_v10 = vadd.f32 %v532_v62, %v528_v56  ;;  %v293_v13 = vadd.f32 %v289_v63, %v285_v59  ;;  %v525_v48 = vadd.f32 %v521_v8, %v505_v61 }
 0x1c4   :  { %v308_v36 = vsel %vm307_vm8, %v1219_v29, %v306_v9  ;;  %vm314_vm0 = vcmp.eq.f32.partialorder %v1254_v26, inf  ;;  %v317_v45 = vand.u32 2147483648, %v1254_v26  ;;  %vm316_vm2 = vcmp.eq.f32.partialorder %v1254_v26, 0.0 }
 0x1c5   :  { %v678_v15 = vpop.eup %677  ;;  %v540_v16 = vadd.f32 1e-08, %v536_v10  ;;  %v1260_v17 = vadd.f32 1e-08, %v293_v13  ;;  %v533_v52 = vmul.f32 %v525_v48, %v525_v48  ;;  %v311_v2 = vsel %vm309_vm13, %v310_v25, %v308_v36 }
 0x1c6   :  { %v680_v18 = vpop.eup %679  ;;  %v543_v19 = vmul.f32 %v678_v15, %v1233_v1 }
 0x1c7   :  { %685 = vrsqrt.f32 %v540_v16  ;;  %v537_v27 = vadd.f32 %v533_v52, %v529_v0  ;;  %v299_v28 = vmul.f32 %v680_v18, %v1229_v38  ;;  %vm558_vm1 = vcmp.eq.f32.partialorder %v540_v16, inf }
 0x1c8   :  { %687 = vrsqrt.f32 %v1260_v17  ;;  %v545_v57 = vsel %vm544_vm9, %v1233_v1, %v543_v19  ;;  %v561_v47 = vand.u32 2147483648, %v540_v16  ;;  %vm560_vm3 = vcmp.eq.f32.partialorder %v540_v16, 0.0 }
 0x1c9   :  { %v682_v20 = vpop.eup %681  ;;  %v541_v24 = vadd.f32 1e-08, %v537_v27  ;;  %v301_v32 = vsel %vm300_vm12, %v1229_v38, %v299_v28  ;;  %v548_v41 = vsel %vm546_vm14, %v547_v35, %v545_v57  ;;  %vm321_vm4 = vcmp.eq.f32.partialorder %v1260_v17, inf }
 0x1ca   :  { %v550_v30 = vmul.f32 %v682_v20, %v539_v33  ;;  %v304_v4 = vsel %vm302_vm15, %v303_v23, %v301_v32  ;;  %vm323_vm6 = vcmp.eq.f32.partialorder %v1260_v17, 0.0  ;;  %v324_v54 = vand.u32 2147483648, %v1260_v17 }
 0x1cb   :  { %689 = vrsqrt.f32 %v541_v24  ;;  %v570_v29 = vsub.f32 %v304_v4, %v548_v41  ;;  %vm565_vm7 = vcmp.eq.f32.partialorder %v541_v24, inf  ;;  %v568_v7 = vand.u32 2147483648, %v541_v24 }
 0x1cc   :  { %v552_v37 = vsel %vm551_vm10, %v539_v33, %v550_v30  ;;  %vm567_vm8 = vcmp.eq.f32.partialorder %v541_v24, 0.0  ;;  %vm628_vm9 = vcmp.eq.s32.totalorder %v815_v3, 1  ;;  %vm627_vm10 = vcmp.eq.s32.totalorder %v815_v3, 0 }
 0x1cd   :  { %v684_v49 = vpop.eup %683  ;;  %v555_v58 = vsel %vm553_vm11, %v554_v31, %v552_v37  ;;  %v574_v34 = vand.u32 2147483647, %v570_v29 }
 0x1ce   :  { %v313_v39 = vmul.f32 %v684_v49, %v1254_v26  ;;  %v571_v40 = vsub.f32 %v311_v2, %v555_v58 }
 0x1d0   :  { %v315_v11 = vsel %vm314_vm0, %v1254_v26, %v313_v39  ;;  %v575_v38 = vand.u32 2147483647, %v571_v40  ;;  %v595_v26 = vsel %vm578_vm5, %v574_v34, 0.0 }
 0x1d1   :  { %v686_v43 = vpop.eup %685  ;;  %v318_v33 = vsel %vm316_vm2, %v317_v45, %v315_v11 }
 0x1d2   :  { %v688_v5 = vpop.eup %687  ;;  %v557_v21 = vmul.f32 %v686_v43, %v540_v16  ;;  %v596_v44 = vsel %vm578_vm5, %v575_v38, 0.0 }
 0x1d3   :  { %v320_v1 = vmul.f32 %v688_v5, %v1260_v17  ;;  %v597_v62 = vadd.f32 %v596_v44, %v595_v26 }
 0x1d4   :  { %v559_v12 = vsel %vm558_vm1, %v540_v16, %v557_v21 }
 0x1d5   :  { %v690_v22 = vpop.eup %689  ;;  %v562_v42 = vsel %vm560_vm3, %v561_v47, %v559_v12  ;;  %v322_v46 = vsel %vm321_vm4, %v1260_v17, %v320_v1 }
 0x1d6   :  { %v564_v50 = vmul.f32 %v690_v22, %v541_v24  ;;  %v572_v53 = vsub.f32 %v318_v33, %v562_v42  ;;  %v325_v56 = vsel %vm323_vm6, %v324_v54, %v322_v46 }
 0x1d8   :  { %v566_v6 = vsel %vm565_vm7, %v541_v24, %v564_v50  ;;  %v576_v55 = vand.u32 2147483647, %v572_v53 }
 0x1d9   :  { %v569_v59 = vsel %vm567_vm8, %v568_v7, %v566_v6 }
 0x1da   :  { %v573_v60 = vsub.f32 %v325_v56, %v569_v59  ;;  %v598_v61 = vsel %vm578_vm5, %v576_v55, 0.0 }
 0x1db   :  { %v599_v51 = vadd.f32 %v598_v61, %v597_v62 }
 0x1dc   :  { %v577_v63 = vand.u32 2147483647, %v573_v60 }
 0x1de   :  { %v600_v8 = vsel %vm578_vm5, %v577_v63, 0.0  ;;  %vm629_vm5 = vcmp.eq.s32.totalorder %v815_v3, 2 }
 0x1df   :  { %v601_v10 = vadd.f32 %v600_v8, %v599_v51 }
 0x1e1   :  { %602 = vadd.xlane.f32.xlu1 %v601_v10 }
 0x1f7   :  { %v587_v13 = vpop.xlane.xlu0 %586 }
 0x1f8   :  { %v588_v48 = vrot.slane %v587_v13, 4 }
 0x1fa   :  { %v589_v14 = vadd.f32 %v588_v48, %v587_v13 }
 0x1fb   :  { %v619_v52 = vpop.xlane.xlu0 %618 }
 0x1fc   :  { %v590_v15 = vrot.slane %v589_v14, 2  ;;  %v620_v18 = vrot.slane %v619_v52, 4 }
 0x1fe   :  { %v591_v16 = vadd.f32 %v590_v15, %v589_v14  ;;  %v621_v27 = vadd.f32 %v620_v18, %v619_v52 }
 0x200   :  { %v592_v17 = vrot.slane %v591_v16, 1  ;;  %v622_v9 = vrot.slane %v621_v27, 2 }
 0x202   :  { %v593_v0 = vadd.f32 %v592_v17, %v591_v16  ;;  %v623_v28 = vadd.f32 %v622_v9, %v621_v27 }
 0x204   :  { %653 = vpush %v593_v0  ;;  %v624_v36 = vrot.slane %v623_v28, 1 }
 0x206   :  { %v625_v49 = vadd.f32 %v624_v36, %v623_v28 }
 0x235   :  { %s654_s8 = spop %653 }
 0x236   :  { %v634_v32 = vstv %s654_s8 }
 0x26e   :  { %v603_v19 = vpop.xlane.xlu1 %602 }
 0x26f   :  { %v604_v20 = vrot.slane %v603_v19, 4 }
 0x271   :  { %v605_v24 = vadd.f32 %v604_v20, %v603_v19 }
 0x273   :  { %v606_v30 = vrot.slane %v605_v24, 2 }
 0x275   :  { %v607_v31 = vadd.f32 %v606_v30, %v605_v24 }
 0x277   :  { %v608_v57 = vrot.slane %v607_v31, 1 }
 0x279   :  { %v609_v37 = vadd.f32 %v608_v57, %v607_v31 }
 0x27b   :  { %655 = vpush %v609_v37 }
 0x27c   :  { %657 = vpush %v625_v49 }
 0x2ac   :  { %s656_s9 = spop %655 }
 0x2ad   :  { %v632_v25 = vstv %s656_s9  ;;  %s658_s10 = spop %657 }
 0x2ae   :  { %v630_v35 = vstv %s658_s10 }
 0x2af   :  { %v631_v58 = vsel %vm629_vm5, %v630_v35, 0.0 }
 0x2b0   :  { %v633_v39 = vsel %vm628_vm9, %v632_v25, %v631_v58 }
 0x2b1   :  { %v635_v23 = vsel %vm627_vm10, %v634_v32, %v633_v39 }
 0x2b2   :  { %636 = vst [vmem:[#allocation7] sm:$0xff] %v635_v23 }
 0x2b3   :  { %746 = shalt.err (!%p743_p6)
}
 0x2b4   :  { %s747_s16 = scalar_lea.hbm %s1309_s2, 128 }
 0x2b5   :  { %p748_p7 = scmp.ne.s32.totalorder %s1309_s2, %s747_s16  ;;  %p751_p8 = scmp.lt.u32.totalorder %s747_s16, %s1309_s2 }
 0x2b7   :  { %p753_p9 = pnand %p751_p8, %p748_p7 }
 0x2b9   :  { %756 = shalt.err (!%p753_p9)
}
 0x2ba   :  { %646 = dma.vmem_to_hbm [thread:$0]  %s644_s12, 128, %s1309_s2, [#allocation4]  }
 0x2bb   :  { %761 = dma.done.wait [#allocation4], 128  }
 0x2bc   :  { %762 = vsyncadd [#allocation4], 4294967168 }
 0x2bd   :  { %650 = vsyncpa [#allocation3], 1 }
 0x2be   :  { %651 = vsyncpa [#allocation6], 1 }
 0x2bf   :  { %652 = vsyncpa [#allocation4], 1 }

</bundles_post_ra>
